<compile_context>
chip_gen: v7x
topology: tpu7x:2x2x1
jax: 0.10.0
libtpu: 0.0.40
codegen_flags: <defaults>
</compile_context>

<pallas_src>
import numpy as np
import jax
import jax.numpy as jnp
from jax.experimental import pallas as pl
from jax.experimental.pallas import tpu as pltpu

# ---------------------------------------------------------------------------
# Hyper-parameters (small, consistent with the module's __init__)
# ---------------------------------------------------------------------------
BATCH_SIZE = 8            # `batch_size` global in the reference
N_INP = 128               # n_inp
N_OUT = 64                # n_out
N_CLASS = 10              # n_class
N_CLASS_PAD = 128         # lane-dense padded classifier width
CLASS_COUNT = 16          # classCount (markov matrix side)
MFLAT = 3 * CLASS_COUNT * CLASS_COUNT   # 768, flattened markov matrix
NUM_STEPS = 2             # number of step values processed in one call
NUM_APIS = 24
NUM_FILES = NUM_STEPS * BATCH_SIZE      # step slices land entirely in `file`
NUM_NODES = NUM_APIS + NUM_FILES


# ---------------------------------------------------------------------------
# Single fused Pallas kernel: whole MINES forward, all steps in one grid
# ---------------------------------------------------------------------------
def _mines_kernel(offs_ref,                                    # scalar prefetch (SMEM)
                  h_ref, m1_ref, m2_ref,
                  we_ref, be_ref,
                  wt1_ref, bt1_ref,
                  wt2_ref, bt2_ref,
                  wcls_ref, bcls_ref,
                  out_ref):
    del offs_ref                      # consumed by the index_maps only
    f32 = jnp.float32
    bf16 = jnp.bfloat16

    # existence path: fused [W_pmi | W_emb] projection -> z_e == cat(z_e1, z_e2)
    z_e = jnp.maximum(
        jnp.dot(h_ref[...].astype(bf16), we_ref[...],
                preferred_element_type=f32) + be_ref[...],
        0.0)                                                    # (B, 2*N_OUT) f32

    # transition path: two projections, kept in vregs (never written to HBM)
    z_t1 = jnp.maximum(
        jnp.dot(m1_ref[...].astype(bf16), wt1_ref[...],
                preferred_element_type=f32) + bt1_ref[...],
        0.0)                                                    # (B, N_OUT) f32
    z_t2 = jnp.maximum(
        jnp.dot(m2_ref[...].astype(bf16), wt2_ref[...],
                preferred_element_type=f32) + bt2_ref[...],
        0.0)                                                    # (B, N_OUT) f32

    # classifier: res = [z_e | z_t1 | z_t2] @ W_cls + b_cls, realized as three
    # dots against static (bf16-tile-aligned) sublane slices of W_cls.
    wc = wcls_ref[...]                                          # (4*N_OUT, 128) bf16
    res = (jnp.dot(z_e.astype(bf16),  wc[0:2 * N_OUT, :],
                   preferred_element_type=f32)
           + jnp.dot(z_t1.astype(bf16), wc[2 * N_OUT:3 * N_OUT, :],
                     preferred_element_type=f32)
           + jnp.dot(z_t2.astype(bf16), wc[3 * N_OUT:4 * N_OUT, :],
                     preferred_element_type=f32)
           + bcls_ref[...])
    out_ref[...] = res.astype(out_ref.dtype)


def mines_fused_all_steps(file_feats, m1_flat, m2_flat, step_block_offs, params):
    """file_feats: (NUM_FILES, N_INP) f32, m*_flat: (num_steps*B, MFLAT) f32,
    step_block_offs: (num_steps,) i32 -> logits (num_steps, B, N_CLASS) f32."""
    num_steps = step_block_offs.shape[0]
    B = BATCH_SIZE
    args = (file_feats, m1_flat, m2_flat,
            params["W_e"],   params["b_e"],
            params["W_t1"],  params["b_t1"],
            params["W_t2"],  params["b_t2"],
            params["W_cls"], params["b_cls"])

    # Weights/biases: constant index_maps -> loaded once, VMEM-resident across
    # the whole grid.  Activations stream one (B, .) block per step.
    def pinned(shape):
        return pl.BlockSpec(shape, lambda s, offs: (0, 0))

    in_specs = [
        pl.BlockSpec((B, N_INP), lambda s, offs: (offs[s], 0)),   # h rows for step s
        pl.BlockSpec((B, MFLAT), lambda s, offs: (s, 0)),         # markov batch 1
        pl.BlockSpec((B, MFLAT), lambda s, offs: (s, 0)),         # markov batch 2
        pinned((N_INP, 2 * N_OUT)),        pinned((1, 2 * N_OUT)),
        pinned((MFLAT, N_OUT)),            pinned((1, N_OUT)),
        pinned((MFLAT, N_OUT)),            pinned((1, N_OUT)),
        pinned((4 * N_OUT, N_CLASS_PAD)),  pinned((1, N_CLASS_PAD)),
    ]
    out_spec = pl.BlockSpec((B, N_CLASS_PAD), lambda s, offs: (s, 0))

    flops = 2 * num_steps * (B * N_INP * (2 * N_OUT)       # existence (fused)
                             + 2 * B * MFLAT * N_OUT       # two transitions
                             + B * (4 * N_OUT) * N_CLASS_PAD)
    bytes_accessed = (sum(int(a.size) * a.dtype.itemsize for a in args)
                      + 4 * num_steps * B * N_CLASS_PAD)
    cost = pl.CostEstimate(flops=flops, transcendentals=0,
                           bytes_accessed=bytes_accessed)

    out = pl.pallas_call(
        _mines_kernel,
        out_shape=jax.ShapeDtypeStruct((num_steps * B, N_CLASS_PAD), jnp.float32),
        grid_spec=pltpu.PrefetchScalarGridSpec(
            num_scalar_prefetch=1,
            grid=(num_steps,),
            in_specs=in_specs,
            out_specs=out_spec),
        compiler_params=pltpu.CompilerParams(
            dimension_semantics=("parallel",)),    # steps independent -> 2 TCs on v7x
        cost_estimate=cost,
    )(step_block_offs, *args)

    return out.reshape(num_steps, B, N_CLASS_PAD)[..., :N_CLASS]


# ---------------------------------------------------------------------------
# Deterministic parameter initialization (xavier-like uniform, bf16 weights)
# ---------------------------------------------------------------------------
def _xavier(key, fan_in, fan_out):
    limit = (6.0 / (fan_in + fan_out)) ** 0.5
    return jax.random.uniform(key, (fan_in, fan_out), jnp.float32, -limit, limit)


def init_params(key):
    ks = jax.random.split(key, 5)
    # per-view existence weights, fused once at init:  W_e = [W_pmi | W_emb]
    w_pmi = _xavier(ks[0], N_INP, N_OUT)
    w_emb = _xavier(ks[1], N_INP, N_OUT)
    # classifier nn.Linear(4*n_out, n_class), zero-padded to 128 lane-dense cols
    w_cls = _xavier(ks[4], 4 * N_OUT, N_CLASS)
    w_cls_pad = jnp.zeros((4 * N_OUT, N_CLASS_PAD), jnp.float32)
    w_cls_pad = w_cls_pad.at[:, :N_CLASS].set(w_cls)
    bf16 = jnp.bfloat16
    return {
        "W_e": jnp.concatenate([w_pmi, w_emb], axis=1).astype(bf16),  # (N_INP, 2*N_OUT)
        "b_e": jnp.zeros((1, 2 * N_OUT), jnp.float32),
        "W_t1": _xavier(ks[2], MFLAT, N_OUT).astype(bf16),
        "b_t1": jnp.zeros((1, N_OUT), jnp.float32),
        "W_t2": _xavier(ks[3], MFLAT, N_OUT).astype(bf16),
        "b_t2": jnp.zeros((1, N_OUT), jnp.float32),
        "W_cls": w_cls_pad.astype(bf16),                              # (4*N_OUT, 128)
        "b_cls": jnp.zeros((1, N_CLASS_PAD), jnp.float32),
    }


# ---------------------------------------------------------------------------
# MINES.forward equivalent, fused over all step values
# ---------------------------------------------------------------------------
def mines_forward_all_steps(params, pos, pos_simclr, node_features,
                            markov_mat1_steps, markov_mat2_steps):
    """Row s of the result equals the original per-step forward for step=s."""
    # TODO(synk): real existence_encoder (DGL heterograph convolutions over
    # g_pmi/g_emb + contrastive loss) and transition_encoder (CNN over markov
    # matrices + SimCLR loss) are undefined in the provided source; linear
    # stand-in encoders are used and their losses are 0.
    del pos, pos_simclr
    num_steps = markov_mat1_steps.shape[0]
    B = BATCH_SIZE
    file_feats = node_features["file"]
    # step range guard: every slice must be non-empty and inside `file` rows
    assert num_steps * B <= file_feats.shape[0], "step exceeds available file rows"

    # Step s of the torch module selects h[-(s+1)*B : -s*B] of h=cat(api,file);
    # those rows live entirely in the `file` block, so we index file_feats
    # directly (no host-side concat or negative slicing).
    step_block_offs = jnp.asarray(
        file_feats.shape[0] // B - 1 - np.arange(num_steps), dtype=jnp.int32)

    m1 = markov_mat1_steps.reshape(num_steps * B, -1)
    m2 = markov_mat2_steps.reshape(num_steps * B, -1)

    res = mines_fused_all_steps(file_feats, m1, m2, step_block_offs, params)
    loss = jnp.float32(0.0)   # loss_e + loss_t of the undefined encoders
    return res, loss


# ---------------------------------------------------------------------------
# Pure-JAX reference (matches the original per-step slicing/concat order)
# ---------------------------------------------------------------------------
def mines_reference(params, node_features, m1_steps, m2_steps):
    f32, bf16 = jnp.float32, jnp.bfloat16
    num_steps = m1_steps.shape[0]
    h = jnp.concatenate([node_features["api"], node_features["file"]], axis=0)

    def proj(x, w, b):
        return jnp.maximum(
            jnp.dot(x.astype(bf16).astype(f32), w.astype(f32)) + b, 0.0)

    outs = []
    for step in range(num_steps):
        if not step:
            h_sel = h[-(step + 1) * BATCH_SIZE:]
        else:
            h_sel = h[-(step + 1) * BATCH_SIZE:-step * BATCH_SIZE]
        m1 = m1_steps[step].reshape(BATCH_SIZE, -1)
        m2 = m2_steps[step].reshape(BATCH_SIZE, -1)
        z_e = proj(h_sel, params["W_e"], params["b_e"])    # == cat(z_e1, z_e2)
        z_t1 = proj(m1, params["W_t1"], params["b_t1"])
        z_t2 = proj(m2, params["W_t2"], params["b_t2"])
        z = jnp.concatenate([z_e, z_t1, z_t2], axis=1)
        res = (jnp.dot(z.astype(bf16).astype(f32), params["W_cls"].astype(f32))
               + params["b_cls"])
        outs.append(res[:, :N_CLASS])
    return jnp.stack(outs, axis=0)


# ---------------------------------------------------------------------------
if __name__ == "__main__":
    key = jax.random.PRNGKey(0)
    k_par, k_api, k_file, k_m1, k_m2 = jax.random.split(key, 5)

    params = init_params(k_par)

    node_features = {
        "api": jax.random.normal(k_api, (NUM_APIS, N_INP), jnp.float32),
        "file": jax.random.normal(k_file, (NUM_FILES, N_INP), jnp.float32),
    }
    # one markov batch per step, torch layout (B, 3, classCount, classCount)
    markov_mat1 = jax.random.uniform(
        k_m1, (NUM_STEPS, BATCH_SIZE, 3, CLASS_COUNT, CLASS_COUNT), jnp.float32)
    markov_mat2 = jax.random.uniform(
        k_m2, (NUM_STEPS, BATCH_SIZE, 3, CLASS_COUNT, CLASS_COUNT), jnp.float32)
    pos = jnp.eye(BATCH_SIZE, dtype=jnp.float32)          # consumed by encoder stand-in (unused)
    pos_simclr = jnp.eye(BATCH_SIZE, dtype=jnp.float32)   # torch.eye(batch_size)

    res, loss = mines_forward_all_steps(params, pos, pos_simclr, node_features,
                                        markov_mat1, markov_mat2)
    res = jax.block_until_ready(res)
    loss = jax.block_until_ready(loss)

    assert res.shape == (NUM_STEPS, BATCH_SIZE, N_CLASS) and res.dtype == jnp.float32
    assert loss.shape == () and loss.dtype == jnp.float32

    ref = jax.block_until_ready(
        mines_reference(params, node_features, markov_mat1, markov_mat2))
    np.testing.assert_allclose(np.asarray(res), np.asarray(ref),
                               rtol=2e-2, atol=2e-2)
    print("KERNEL_OK")
</pallas_src>

<mosaic_0001>
module attributes {stable_mosaic.version = 11 : i64} {
  func.func @_mines_kernel(%arg0: i32, %arg1: memref<2xi32, #tpu.memory_space<smem>>, %arg2: memref<8x128xf32, #tpu.memory_space<vmem>>, %arg3: memref<8x768xf32, #tpu.memory_space<vmem>>, %arg4: memref<8x768xf32, #tpu.memory_space<vmem>>, %arg5: memref<128x128xbf16, #tpu.memory_space<vmem>>, %arg6: memref<1x128xf32, #tpu.memory_space<vmem>>, %arg7: memref<768x64xbf16, #tpu.memory_space<vmem>>, %arg8: memref<1x64xf32, #tpu.memory_space<vmem>>, %arg9: memref<768x64xbf16, #tpu.memory_space<vmem>>, %arg10: memref<1x64xf32, #tpu.memory_space<vmem>>, %arg11: memref<256x128xbf16, #tpu.memory_space<vmem>>, %arg12: memref<1x128xf32, #tpu.memory_space<vmem>>, %arg13: memref<8x128xf32, #tpu.memory_space<vmem>>) attributes {dimension_semantics = [#tpu.dimension_semantics<parallel>], iteration_bounds = array<i64: 2>, scalar_prefetch = 1 : i64, scratch_operands = 0 : i64, tpu.core_type = #tpu.core_type<tc>, window_params = [{transform_indices = @transform_0, window_bounds = array<i64: 8, 128>}, {transform_indices = @transform_1, window_bounds = array<i64: 8, 768>}, {transform_indices = @transform_2, window_bounds = array<i64: 8, 768>}, {pipeline_mode = #tpu.pipeline_mode<synchronous>, transform_indices = @transform_3, window_bounds = array<i64: 128, 128>}, {pipeline_mode = #tpu.pipeline_mode<synchronous>, transform_indices = @transform_4, window_bounds = array<i64: 1, 128>}, {pipeline_mode = #tpu.pipeline_mode<synchronous>, transform_indices = @transform_5, window_bounds = array<i64: 768, 64>}, {pipeline_mode = #tpu.pipeline_mode<synchronous>, transform_indices = @transform_6, window_bounds = array<i64: 1, 64>}, {pipeline_mode = #tpu.pipeline_mode<synchronous>, transform_indices = @transform_7, window_bounds = array<i64: 768, 64>}, {pipeline_mode = #tpu.pipeline_mode<synchronous>, transform_indices = @transform_8, window_bounds = array<i64: 1, 64>}, {pipeline_mode = #tpu.pipeline_mode<synchronous>, transform_indices = @transform_9, window_bounds = array<i64: 256, 128>}, {pipeline_mode = #tpu.pipeline_mode<synchronous>, transform_indices = @transform_10, window_bounds = array<i64: 1, 128>}, {transform_indices = @transform_11, window_bounds = array<i64: 8, 128>}]} {
    %c0 = arith.constant 0 : index
    %c0_0 = arith.constant 0 : index
    %0 = vector.load %arg2[%c0, %c0_0] : memref<8x128xf32, #tpu.memory_space<vmem>>, vector<8x128xf32>
    %1 = arith.truncf %0 : vector<8x128xf32> to vector<8x128xbf16>
    %c0_1 = arith.constant 0 : index
    %c0_2 = arith.constant 0 : index
    %2 = vector.load %arg5[%c0_1, %c0_2] : memref<128x128xbf16, #tpu.memory_space<vmem>>, vector<128x128xbf16>
    %cst = arith.constant dense<0.000000e+00> : vector<8x128xf32>
    %3 = tpu.matmul %1, %2, %cst {dimension_numbers = #tpu.dot_dimension_numbers<[1], [0], [0], [1], [0, 0, 1, 1], [], []>} : vector<8x128xbf16>, vector<128x128xbf16>, vector<8x128xf32> -> vector<8x128xf32>
    %c0_3 = arith.constant 0 : index
    %c0_4 = arith.constant 0 : index
    %4 = vector.load %arg6[%c0_3, %c0_4] : memref<1x128xf32, #tpu.memory_space<vmem>>, vector<1x128xf32>
    %5 = vector.broadcast %4 : vector<1x128xf32> to vector<8x128xf32>
    %6 = arith.addf %3, %5 : vector<8x128xf32>
    %cst_5 = arith.constant 0.000000e+00 : f32
    %7 = vector.broadcast %cst_5 : f32 to vector<8x128xf32>
    %8 = arith.maximumf %6, %7 : vector<8x128xf32>
    %c0_6 = arith.constant 0 : index
    %c0_7 = arith.constant 0 : index
    %9 = vector.load %arg3[%c0_6, %c0_7] : memref<8x768xf32, #tpu.memory_space<vmem>>, vector<8x768xf32>
    %10 = arith.truncf %9 : vector<8x768xf32> to vector<8x768xbf16>
    %c0_8 = arith.constant 0 : index
    %c0_9 = arith.constant 0 : index
    %11 = vector.load %arg7[%c0_8, %c0_9] : memref<768x64xbf16, #tpu.memory_space<vmem>>, vector<768x64xbf16>
    %cst_10 = arith.constant dense<0.000000e+00> : vector<8x64xf32>
    %12 = tpu.matmul %10, %11, %cst_10 {dimension_numbers = #tpu.dot_dimension_numbers<[1], [0], [0], [1], [0, 0, 1, 1], [], []>} : vector<8x768xbf16>, vector<768x64xbf16>, vector<8x64xf32> -> vector<8x64xf32>
    %c0_11 = arith.constant 0 : index
    %c0_12 = arith.constant 0 : index
    %13 = vector.load %arg8[%c0_11, %c0_12] : memref<1x64xf32, #tpu.memory_space<vmem>>, vector<1x64xf32>
    %14 = vector.broadcast %13 : vector<1x64xf32> to vector<8x64xf32>
    %15 = arith.addf %12, %14 : vector<8x64xf32>
    %cst_13 = arith.constant 0.000000e+00 : f32
    %16 = vector.broadcast %cst_13 : f32 to vector<8x64xf32>
    %17 = arith.maximumf %15, %16 : vector<8x64xf32>
    %c0_14 = arith.constant 0 : index
    %c0_15 = arith.constant 0 : index
    %18 = vector.load %arg4[%c0_14, %c0_15] : memref<8x768xf32, #tpu.memory_space<vmem>>, vector<8x768xf32>
    %19 = arith.truncf %18 : vector<8x768xf32> to vector<8x768xbf16>
    %c0_16 = arith.constant 0 : index
    %c0_17 = arith.constant 0 : index
    %20 = vector.load %arg9[%c0_16, %c0_17] : memref<768x64xbf16, #tpu.memory_space<vmem>>, vector<768x64xbf16>
    %cst_18 = arith.constant dense<0.000000e+00> : vector<8x64xf32>
    %21 = tpu.matmul %19, %20, %cst_18 {dimension_numbers = #tpu.dot_dimension_numbers<[1], [0], [0], [1], [0, 0, 1, 1], [], []>} : vector<8x768xbf16>, vector<768x64xbf16>, vector<8x64xf32> -> vector<8x64xf32>
    %c0_19 = arith.constant 0 : index
    %c0_20 = arith.constant 0 : index
    %22 = vector.load %arg10[%c0_19, %c0_20] : memref<1x64xf32, #tpu.memory_space<vmem>>, vector<1x64xf32>
    %23 = vector.broadcast %22 : vector<1x64xf32> to vector<8x64xf32>
    %24 = arith.addf %21, %23 : vector<8x64xf32>
    %cst_21 = arith.constant 0.000000e+00 : f32
    %25 = vector.broadcast %cst_21 : f32 to vector<8x64xf32>
    %26 = arith.maximumf %24, %25 : vector<8x64xf32>
    %c0_22 = arith.constant 0 : index
    %c0_23 = arith.constant 0 : index
    %27 = vector.load %arg11[%c0_22, %c0_23] : memref<256x128xbf16, #tpu.memory_space<vmem>>, vector<256x128xbf16>
    %28 = arith.truncf %8 : vector<8x128xf32> to vector<8x128xbf16>
    %29 = vector.extract_strided_slice %27 {offsets = [0, 0], sizes = [128, 128], strides = [1, 1]} : vector<256x128xbf16> to vector<128x128xbf16>
    %cst_24 = arith.constant dense<0.000000e+00> : vector<8x128xf32>
    %30 = tpu.matmul %28, %29, %cst_24 {dimension_numbers = #tpu.dot_dimension_numbers<[1], [0], [0], [1], [0, 0, 1, 1], [], []>} : vector<8x128xbf16>, vector<128x128xbf16>, vector<8x128xf32> -> vector<8x128xf32>
    %31 = arith.truncf %17 : vector<8x64xf32> to vector<8x64xbf16>
    %32 = vector.extract_strided_slice %27 {offsets = [128, 0], sizes = [64, 128], strides = [1, 1]} : vector<256x128xbf16> to vector<64x128xbf16>
    %cst_25 = arith.constant dense<0.000000e+00> : vector<8x128xf32>
    %33 = tpu.matmul %31, %32, %cst_25 {dimension_numbers = #tpu.dot_dimension_numbers<[1], [0], [0], [1], [0, 0, 1, 1], [], []>} : vector<8x64xbf16>, vector<64x128xbf16>, vector<8x128xf32> -> vector<8x128xf32>
    %34 = arith.addf %30, %33 : vector<8x128xf32>
    %35 = arith.truncf %26 : vector<8x64xf32> to vector<8x64xbf16>
    %36 = vector.extract_strided_slice %27 {offsets = [192, 0], sizes = [64, 128], strides = [1, 1]} : vector<256x128xbf16> to vector<64x128xbf16>
    %cst_26 = arith.constant dense<0.000000e+00> : vector<8x128xf32>
    %37 = tpu.matmul %35, %36, %cst_26 {dimension_numbers = #tpu.dot_dimension_numbers<[1], [0], [0], [1], [0, 0, 1, 1], [], []>} : vector<8x64xbf16>, vector<64x128xbf16>, vector<8x128xf32> -> vector<8x128xf32>
    %38 = arith.addf %34, %37 : vector<8x128xf32>
    %c0_27 = arith.constant 0 : index
    %c0_28 = arith.constant 0 : index
    %39 = vector.load %arg12[%c0_27, %c0_28] : memref<1x128xf32, #tpu.memory_space<vmem>>, vector<1x128xf32>
    %40 = vector.broadcast %39 : vector<1x128xf32> to vector<8x128xf32>
    %41 = arith.addf %38, %40 : vector<8x128xf32>
    %c0_29 = arith.constant 0 : index
    %c0_30 = arith.constant 0 : index
    %42 = vector.load %arg13[%c0_29, %c0_30] : memref<8x128xf32, #tpu.memory_space<vmem>>, vector<8x128xf32>
    tpu.vector_store %arg13[%c0_29, %c0_30], %41 {strides = array<i32>} : memref<8x128xf32, #tpu.memory_space<vmem>>, vector<8x128xf32>,
    return
  }
  func.func @transform_0(%arg0: i32, %arg1: memref<2xi32, #tpu.memory_space<smem>>) -> (i32, i32) {
    %0 = arith.index_cast %arg0 : i32 to index
    %1 = memref.load %arg1[%0] : memref<2xi32, #tpu.memory_space<smem>>
    %c0_i32 = arith.constant 0 : i32
    %c0_i32_0 = arith.constant 0 : i32
    return %1, %c0_i32 : i32, i32
  }
  func.func @transform_1(%arg0: i32, %arg1: memref<2xi32, #tpu.memory_space<smem>>) -> (i32, i32) {
    %c0_i32 = arith.constant 0 : i32
    %c0_i32_0 = arith.constant 0 : i32
    return %arg0, %c0_i32 : i32, i32
  }
  func.func @transform_2(%arg0: i32, %arg1: memref<2xi32, #tpu.memory_space<smem>>) -> (i32, i32) {
    %c0_i32 = arith.constant 0 : i32
    %c0_i32_0 = arith.constant 0 : i32
    return %arg0, %c0_i32 : i32, i32
  }
  func.func @transform_3(%arg0: i32, %arg1: memref<2xi32, #tpu.memory_space<smem>>) -> (i32, i32) {
    %c0_i32 = arith.constant 0 : i32
    %c0_i32_0 = arith.constant 0 : i32
    %c0_i32_1 = arith.constant 0 : i32
    return %c0_i32, %c0_i32_0 : i32, i32
  }
  func.func @transform_4(%arg0: i32, %arg1: memref<2xi32, #tpu.memory_space<smem>>) -> (i32, i32) {
    %c0_i32 = arith.constant 0 : i32
    %c0_i32_0 = arith.constant 0 : i32
    %c0_i32_1 = arith.constant 0 : i32
    return %c0_i32, %c0_i32_0 : i32, i32
  }
  func.func @transform_5(%arg0: i32, %arg1: memref<2xi32, #tpu.memory_space<smem>>) -> (i32, i32) {
    %c0_i32 = arith.constant 0 : i32
    %c0_i32_0 = arith.constant 0 : i32
    %c0_i32_1 = arith.constant 0 : i32
    return %c0_i32, %c0_i32_0 : i32, i32
  }
  func.func @transform_6(%arg0: i32, %arg1: memref<2xi32, #tpu.memory_space<smem>>) -> (i32, i32) {
    %c0_i32 = arith.constant 0 : i32
    %c0_i32_0 = arith.constant 0 : i32
    %c0_i32_1 = arith.constant 0 : i32
    return %c0_i32, %c0_i32_0 : i32, i32
  }
  func.func @transform_7(%arg0: i32, %arg1: memref<2xi32, #tpu.memory_space<smem>>) -> (i32, i32) {
    %c0_i32 = arith.constant 0 : i32
    %c0_i32_0 = arith.constant 0 : i32
    %c0_i32_1 = arith.constant 0 : i32
    return %c0_i32, %c0_i32_0 : i32, i32
  }
  func.func @transform_8(%arg0: i32, %arg1: memref<2xi32, #tpu.memory_space<smem>>) -> (i32, i32) {
    %c0_i32 = arith.constant 0 : i32
    %c0_i32_0 = arith.constant 0 : i32
    %c0_i32_1 = arith.constant 0 : i32
    return %c0_i32, %c0_i32_0 : i32, i32
  }
  func.func @transform_9(%arg0: i32, %arg1: memref<2xi32, #tpu.memory_space<smem>>) -> (i32, i32) {
    %c0_i32 = arith.constant 0 : i32
    %c0_i32_0 = arith.constant 0 : i32
    %c0_i32_1 = arith.constant 0 : i32
    return %c0_i32, %c0_i32_0 : i32, i32
  }
  func.func @transform_10(%arg0: i32, %arg1: memref<2xi32, #tpu.memory_space<smem>>) -> (i32, i32) {
    %c0_i32 = arith.constant 0 : i32
    %c0_i32_0 = arith.constant 0 : i32
    %c0_i32_1 = arith.constant 0 : i32
    return %c0_i32, %c0_i32_0 : i32, i32
  }
  func.func @transform_11(%arg0: i32, %arg1: memref<2xi32, #tpu.memory_space<smem>>) -> (i32, i32) {
    %c0_i32 = arith.constant 0 : i32
    %c0_i32_0 = arith.constant 0 : i32
    return %arg0, %c0_i32 : i32, i32
  }
}

</mosaic_0001>

<bundles_post_ra>
// kernel: tpu_custom_call.1
= control target key start
LH: loop header
LB: loop body
LE: loop exit
PB: predicated region body
PF: predicated region fallthrough
CT: control target
= control target key end

     0   :  { %s3175_s0 = inlined_call_operand.vmem [shape: s32[2], index: 0, kind: input, shape index: {}]   ;;  %s3176_s1 = inlined_call_operand.vmem [shape: f32[16,128], index: 1, kind: input, shape index: {}]   ;;  %s3177_s2 = inlined_call_operand.vmem [shape: f32[16,768], index: 2, kind: input, shape index: {}]   ;;  %s3178_s3 = inlined_call_operand.vmem [shape: f32[16,768], index: 3, kind: input, shape index: {}]   ;;  %s3179_s4 = inlined_call_operand.vmem [shape: bf16[128,128], index: 4, kind: input, shape index: {}]   ;;  %s3180_s5 = inlined_call_operand.vmem [shape: f32[1,128], index: 5, kind: input, shape index: {}]   ;;  %s3181_s6 = inlined_call_operand.vmem [shape: bf16[768,64], index: 6, kind: input, shape index: {}]   ;;  %s3182_s7 = inlined_call_operand.vmem [shape: f32[1,64], index: 7, kind: input, shape index: {}]   ;;  %s3183_s8 = inlined_call_operand.vmem [shape: bf16[768,64], index: 8, kind: input, shape index: {}]   ;;  %s3184_s9 = inlined_call_operand.vmem [shape: f32[1,64], index: 9, kind: input, shape index: {}]   ;;  %s3185_s10 = inlined_call_operand.vmem [shape: bf16[256,128], index: 10, kind: input, shape index: {}]   ;;  %s3186_s11 = inlined_call_operand.vmem [shape: f32[1,128], index: 11, kind: input, shape index: {}]   ;;  %s3187_s12 = inlined_call_operand.hbm [shape: f32[16,128], index: 12, kind: output, shape index: {}]  }
   0x1   :  { %s17_s23 = sshll.u32 %s3175_s0, 4  ;;  %s18_s23 = int_to_ptr.vmem [resolvable:$true] %s17_s23 }
   0x2   :  { %s2489_s24 = scalar_lea.vmem %s18_s23, 16  ;;  %p2494_p1 = scmp.lt.s32.totalorder %s18_s23, %s18_s23 }
   0x3   :  { %p2490_p0 = scmp.ne.s32.totalorder %s18_s23, %s2489_s24  ;;  %p2495_p2 = scmp.lt.s32.totalorder %s2489_s24, %s2489_s24 }
   0x5   :  { %p2496_p3 = por %p2495_p2, %p2494_p1 }
   0x7   :  { %p2497_p4 = pnand %p2496_p3, %p2490_p0 }
   0x9   :  { %2500 = shalt.err (!%p2497_p4)  }
   0xa   :  { %s2567_s25 = smov [#allocation3]  }
   0xb   :  { %20 = dma.vmem_to_smem %s18_s23, 16, %s2567_s25, [#allocation2] }
   0xc   :  { %2545 = dma.done.wait [#allocation2], 16 }
   0xd   :  { %2546 = vsyncadd [#allocation2], 4294967280 }
   0xe   :  { %22 = sfence }
   0xf   :  { %23 = vsyncpa [#allocation5], 0 }
  0x10   :  { %25 = vsyncpa [#allocation5 + $0x1], 0  ;;  %s2639_s26 = smov 0   ;;  %s2641_s27 = smov 0  }
  0x11   :  { %s2643_s0 = smov 0   ;;  %s2645_s28 = smov 0  }
  0x12 LB: > { %3192 = sst [smem:[#allocation8_spill]] %s2561_s0  ;;  %s2660_s29 = sadd.s32 4294967295, %s2565_s28   ;;  %s2565_s28 = sphi %s2645_s28, %s3201_s28   ;;  %s2561_s0 = sphi %s2643_s0, %s3203_s0   ;;  %s2557_s27 = sphi %s2641_s27, %s3205_s27   ;;  %s2553_s26 = sphi %s2639_s26, %s3204_s26  }
  0x13   : > { %s1964_s30 = sadd.s32 4294967294, %s2565_s28   ;;  %s2664_s13 = sadd.s32 1, %s2565_s28  }
  0x14   : > { %3193 = sst [smem:[#allocation9_spill]] %s2664_s13  ;;  %s286_s14 = sadd.s32 1, %s2561_s0 }
  0x15   : > { %s283_s15 = ssub.s32 %s2565_s28, %s2664_s13  ;;  %p296_p5 = scmp.ne.s32.totalorder %s2561_s0, %s2557_s27 }
  0x16   : > { %p284_p6 = scmp.eq.s32.totalorder %s283_s15, 0  ;;  %p297_p7 = scmp.eq.s32.totalorder %s2660_s29, 1 }
  0x17   : > { %p302_p8 = scmp.ne.s32.totalorder %s2557_s27, %s2553_s26  ;;  %p303_p9 = scmp.eq.s32.totalorder %s1964_s30, 1 }
  0x18   : > { %s2675_s16 = scalar_select %p284_p6, %s2561_s0, %s286_s14  }
  0x19   : > { %p2677_p10 = por %p297_p7, %p296_p5  ;;  %p2681_p11 = por %p303_p9, %p302_p8 }
  0x1a   : > { %3194 = sst [smem:[#allocation10_spill]] %s2675_s16  ;;  %p1967_p12 = scmp.ge.s32.totalorder %s2565_s28, 1 }
  0x1b   : > { %s3196_s18 = scalar_select %p2681_p11, 1, 0 }
  0x1c   : > { %p370_p13 = scmp.lt.s32.totalorder %s2565_s28, 3 }
  0x1d   : > { %3197 = sst [smem:[#allocation11_spill]] %s3196_s18 }
  0x1e   : > { %p371_p0 = pnand %p1967_p12, %p370_p13 }
  0x1f   : > { %v2369_v0 = vld [vmem:[%s3179_s4] sm:$0xff] (!%p371_p0)   ;;  %v2568_v1 = vmov (!%p371_p0), 0.0   ;;  %vm2569_vm0 = vmmov (!%p371_p0), 0   ;;  %v2372_v4 = vld [vmem:[%s3179_s4 + $0x8] sm:$0xff] (!%p371_p0)   ;;  %s420_s19 = sld [smem:[#allocation3 + %s2660_s29]] (!%p371_p0)  ;;  %v2375_v7 = vld [vmem:[%s3179_s4 + $0x10] sm:$0xff] (!%p371_p0)  }
  0x20   : > { %374 = sbr.rel (%p371_p0) target bundleno = 611 (0x263), region = 64  ;;  %2262 = vmatprep.subr.bf16.mxu0 (!%p371_p0), %v2568_v1  ;;  %v2370_v2 = vld [vmem:[%s3181_s6 + $0x40] sm:$0xff] (!%p371_p0)   ;;  %2278 = vmatprep.mubr.msk.bf16.mxu0 (!%p371_p0), %vm2569_vm0, %v2568_v1  ;;  %v2373_v5 = vld [vmem:[%s3181_s6 + $0x48] sm:$0xff] (!%p371_p0)   ;;  %v2376_v8 = vld [vmem:[%s3181_s6 + $0x50] sm:$0xff] (!%p371_p0)   ;;  %p426_p1 = scmp.lt.s32.totalorder (!%p371_p0), %s2660_s29, 1  ;;  %vm1657_vm1 = vcmask (!%p371_p0), 523264  }
  0x21   : > { %2263 = vmatpush3.bf16.msra.mxu0 (!%p371_p0), %v2369_v0  ;;  %v2371_v3 = vld [vmem:[%s3181_s6] sm:$0xff] (!%p371_p0)   ;;  %2111 = vmatprep.subr.bf16.mxu1 (!%p371_p0), %v2370_v2  ;;  %v2374_v6 = vld [vmem:[%s3181_s6 + $0x8] sm:$0xff] (!%p371_p0)   ;;  %v2377_v9 = vld [vmem:[%s3181_s6 + $0x10] sm:$0xff] (!%p371_p0)  }
  0x22   : > { %2264 = vmatprep.subr.bf16.mxu0 (!%p371_p0), %v2568_v1  ;;  %2112 = vmatpush3.bf16.msra.mxu1 (!%p371_p0), %v2371_v3  ;;  %v2378_v10 = vld [vmem:[%s3179_s4 + $0x18] sm:$0xff] (!%p371_p0)   ;;  %v2382_v13 = vld [vmem:[%s3181_s6 + $0x60] sm:$0xff] (!%p371_p0)   ;;  %v2385_v16 = vld [vmem:[%s3181_s6 + $0x68] sm:$0xff] (!%p371_p0)  }
  0x23   : > { %2113 = vmatprep.subr.bf16.mxu1 (!%p371_p0), %v2373_v5  ;;  %v2379_v11 = vld [vmem:[%s3181_s6 + $0x58] sm:$0xff] (!%p371_p0)   ;;  %v2381_v14 = vld [vmem:[%s3179_s4 + $0x20] sm:$0xff] (!%p371_p0)   ;;  %v2384_v17 = vld [vmem:[%s3179_s4 + $0x28] sm:$0xff] (!%p371_p0)  }
  0x24   : > { %v2380_v12 = vld [vmem:[%s3181_s6 + $0x18] sm:$0xff] (!%p371_p0)   ;;  %v2383_v15 = vld [vmem:[%s3181_s6 + $0x20] sm:$0xff] (!%p371_p0)   ;;  %v2386_v18 = vld [vmem:[%s3181_s6 + $0x28] sm:$0xff] (!%p371_p0)  }
  0x25   : > { %2265 = vmatpush3.bf16.msra.mxu0 (!%p371_p0), %v2372_v4  ;;  %p421_p2 = scmp.lt.s32.totalorder (!%p371_p0), %s420_s19, 1  ;;  %v2388_v19 = vld [vmem:[%s3181_s6 + $0x70] sm:$0xff] (!%p371_p0)   ;;  %v2390_v22 = vld [vmem:[%s3179_s4 + $0x38] sm:$0xff] (!%p371_p0)   ;;  %v2393_v27 = vld [vmem:[%s3181_s6 + $0xc0] sm:$0xff] (!%p371_p0)  }
  0x26   : > { %2266 = vmatprep.subr.bf16.mxu0 (!%p371_p0), %v2568_v1  ;;  %2114 = vmatpush3.bf16.msra.mxu1 (!%p371_p0), %v2374_v6  ;;  %v2387_v20 = vld [vmem:[%s3179_s4 + $0x30] sm:$0xff] (!%p371_p0)   ;;  %v2391_v23 = vld [vmem:[%s3181_s6 + $0x78] sm:$0xff] (!%p371_p0)   ;;  %v2394_v29 = vld [vmem:[%s3181_s6 + $0x80] sm:$0xff] (!%p371_p0)  }
  0x27   : > { %2115 = vmatprep.subr.bf16.mxu1 %v2376_v8  ;;  %s2739_s20 = scalar_select %p426_p1, %s2660_s29, 1  ;;  %v2389_v21 = vld [vmem:[%s3181_s6 + $0x30] sm:$0xff]   ;;  %v2392_v26 = vld [vmem:[%s3181_s6 + $0x38] sm:$0xff]   ;;  %v2395_v32 = vld [vmem:[%s3181_s6 + $0x140] sm:$0xff]  }
  0x28   : > { %s3207_s19 = smov (!%p421_p2, %s420_s19), 1  ;;  %v2396_v33 = vld [vmem:[%s3181_s6 + $0x100] sm:$0xff]   ;;  %v2397_v35 = vld [vmem:[%s3181_s6 + $0xc8] sm:$0xff]   ;;  %v2401_v39 = vld [vmem:[%s3181_s6 + $0xd0] sm:$0xff]  }
  0x29   : > { %2267 = vmatpush3.bf16.msra.mxu0 %v2375_v7  ;;  %s1969_s21 = sshll.u32 %s3207_s19, 3  ;;  %s3198_s15 = smul.u32 48, %s2739_s20  ;;  %v2398_v36 = vld [vmem:[%s3181_s6 + $0x88] sm:$0xff]   ;;  %v2402_v40 = vld [vmem:[%s3181_s6 + $0x90] sm:$0xff]   ;;  %v2405_v43 = vld [vmem:[%s3181_s6 + $0xd8] sm:$0xff]  }
  0x2a   : > { %2268 = vmatprep.subr.bf16.mxu0 %v2568_v1  ;;  %2116 = vmatpush3.bf16.msra.mxu1 %v2377_v9  ;;  %s424_s19 = scalar_lea.vmem %s3176_s1, %s1969_s21  ;;  %v2399_v37 = vld [vmem:[%s3181_s6 + $0x148] sm:$0xff]   ;;  %v2403_v41 = vld [vmem:[%s3181_s6 + $0x150] sm:$0xff]   ;;  %v2406_v44 = vld [vmem:[%s3181_s6 + $0x98] sm:$0xff]   ;;  %s3199_s24 = smul.u32 48, %s2739_s20 }
  0x2b   : > { %2117 = vmatprep.subr.bf16.mxu1 %v2379_v11  ;;  %s2773_s0 = scalar_lea.vmem %s3177_s2, %s3198_s15  ;;  %v437_v24 = vld [vmem:[%s424_s19] sm:$0xff]  ;;  %v2400_v38 = vld [vmem:[%s3181_s6 + $0x108] sm:$0xff]   ;;  %v2404_v42 = vld [vmem:[%s3181_s6 + $0x110] sm:$0xff]   ;;  %s2099_s21 = sshll.u32 %s2660_s29, 7 }
  0x2c   : > { %v552_v25 = vld [vmem:[%s2773_s0 + $0x8] sm:$0xff]  ;;  %v551_v30 = vld [vmem:[%s2773_s0] sm:$0xff]  ;;  %v438_v31 = vpack.c.bf16 %v437_v24, %v437_v24  ;;  %v2407_v45 = vld [vmem:[%s3181_s6 + $0x158] sm:$0xff]   ;;  %s2976_s18 = scalar_lea.vmem %s3178_s3, %s3199_s24  ;;  %s417_s24 = sand.u32 1, %s2557_s27  }
  0x2d   : > { %2269 = vmatpush3.bf16.msra.mxu0 %v2378_v10  ;;  %v558_v28 = vpack.c.bf16 %v552_v25, %v552_v25  ;;  %v557_v34 = vpack.c.bf16 %v551_v30, %v551_v30  ;;  %v2408_v46 = vld [vmem:[%s3181_s6 + $0x118] sm:$0xff]   ;;  %v2409_v47 = vld [vmem:[%s3181_s6 + $0xe0] sm:$0xff]   ;;  %v2413_v51 = vld [vmem:[%s3181_s6 + $0xe8] sm:$0xff]   ;;  %s1968_s25 = sshll.u32 %s417_s24, 3  ;;  %s3133_s16 = scalar_lea.hbm %s3187_s12, %s2099_s21 }
  0x2e   : > { %2270 = vmatprep.subr.bf16.mxu0 %v2568_v1  ;;  %2118 = vmatpush3.bf16.msra.mxu1 %v2380_v12  ;;  %v2410_v48 = vld [vmem:[%s3181_s6 + $0xa0] sm:$0xff]   ;;  %v2414_v52 = vld [vmem:[%s3181_s6 + $0xa8] sm:$0xff]   ;;  %v2417_v55 = vld [vmem:[%s3181_s6 + $0xf0] sm:$0xff]   ;;  %s1868_s19 = scalar_lea.sflag [#allocation5], %s417_s24  ;;  %s2570_s15 = smov [#allocation4]  }
  0x2f   : > { %2119 = vmatprep.subr.bf16.mxu1 %v2382_v13  ;;  %986 = vmatprep.mubr.bf16.mxu1 %v558_v28  ;;  %v2411_v49 = vld [vmem:[%s3181_s6 + $0x160] sm:$0xff]   ;;  %v2415_v53 = vld [vmem:[%s3181_s6 + $0x168] sm:$0xff]   ;;  %v2418_v56 = vld [vmem:[%s3181_s6 + $0xb0] sm:$0xff]   ;;  %s2505_s22 = sshll.u32 %s2570_s15, 4  ;;  %s2506_s22 = int_to_ptr.vmem [resolvable:$false] %s2505_s22 }
  0x30   : > { %v2412_v50 = vld [vmem:[%s3181_s6 + $0x120] sm:$0xff]   ;;  %v2416_v54 = vld [vmem:[%s3181_s6 + $0x128] sm:$0xff]   ;;  %v2419_v57 = vld [vmem:[%s3181_s6 + $0x170] sm:$0xff]   ;;  %s2507_s23 = scalar_lea.vmem %s2506_s22, 256 }
  0x31   : > { %2271 = vmatpush3.bf16.msra.mxu0 %v2381_v14  ;;  %v2420_v58 = vld [vmem:[%s3181_s6 + $0x130] sm:$0xff]   ;;  %v2421_v59 = vld [vmem:[%s3181_s6 + $0xf8] sm:$0xff]   ;;  %v556_v3 = vld [vmem:[%s2773_s0 + $0x28] sm:$0xff] }
  0x32   : > { %2272 = vmatprep.subr.bf16.mxu0 %v2568_v1  ;;  %2120 = vmatpush3.bf16.msra.mxu1 %v2383_v15  ;;  %v554_v60 = vld [vmem:[%s2773_s0 + $0x18] sm:$0xff]  ;;  %v553_v2 = vld [vmem:[%s2773_s0 + $0x10] sm:$0xff]  ;;  %v2425_v4 = vld [vmem:[%s3183_s8 + $0x40] sm:$0xff]   ;;  %v562_v5 = vpack.c.bf16 %v556_v3, %v556_v3 }
  0x33   : > { %2121 = vmatprep.subr.bf16.mxu1 %v2385_v16  ;;  %v2422_v61 = vld [vmem:[%s3181_s6 + $0xb8] sm:$0xff]   ;;  %v560_v63 = vpack.c.bf16 %v554_v60, %v554_v60  ;;  %v2426_v6 = vld [vmem:[%s3183_s8] sm:$0xff]   ;;  %v559_v8 = vpack.c.bf16 %v553_v2, %v553_v2  ;;  %v2429_v12 = vld [vmem:[%s3183_s8 + $0x48] sm:$0xff]  }
  0x34   : > { %v2423_v62 = vld [vmem:[%s3181_s6 + $0x178] sm:$0xff]   ;;  %v555_v7 = vld [vmem:[%s2773_s0 + $0x20] sm:$0xff]  ;;  %v2430_v13 = vld [vmem:[%s3183_s8 + $0x8] sm:$0xff]   ;;  %s419_s0 = scalar_lea.vmem [#allocation4], %s1968_s25 }
  0x35   : > { %2273 = vmatpush3.bf16.msra.mxu0 %v2384_v17  ;;  %v2424_v0 = vld [vmem:[%s3181_s6 + $0x138] sm:$0xff]   ;;  %v2427_v9 = vld [vmem:[%s3183_s8 + $0xc0] sm:$0xff]   ;;  %v561_v11 = vpack.c.bf16 %v555_v7, %v555_v7  ;;  %v2431_v14 = vld [vmem:[%s3183_s8 + $0xc8] sm:$0xff]   ;;  %s1881_s30 = sshll.u32 %s419_s0, 4  ;;  %s3135_s30 = int_to_ptr.vmem [resolvable:$true] %s1881_s30 }
  0x36   : > { %2274 = vmatprep.subr.bf16.mxu0 %v2568_v1  ;;  %2122 = vmatpush3.bf16.msra.mxu1 %v2386_v18  ;;  %v2428_v10 = vld [vmem:[%s3183_s8 + $0x80] sm:$0xff]   ;;  %v2432_v15 = vld [vmem:[%s3183_s8 + $0x88] sm:$0xff]   ;;  %v2433_v16 = vld [vmem:[%s3183_s8 + $0x50] sm:$0xff]   ;;  %s2501_s29 = scalar_lea.vmem %s3135_s30, 128  ;;  %p2508_p6 = scmp.lt.s32.totalorder %s3135_s30, %s2506_s22 }
  0x37   : > { %2123 = vmatprep.subr.bf16.mxu1 %v2388_v19  ;;  %v2434_v17 = vld [vmem:[%s3183_s8 + $0x10] sm:$0xff]   ;;  %v2441_v24 = vld [vmem:[%s3183_s8 + $0x60] sm:$0xff]   ;;  %v2445_v28 = vld [vmem:[%s3183_s8 + $0x68] sm:$0xff]   ;;  %p2502_p3 = scmp.ne.s32.totalorder %s3135_s30, %s2501_s29  ;;  %p2509_p7 = scmp.lt.s32.totalorder %s2507_s23, %s2501_s29 }
  0x38   : > { %v2435_v18 = vld [vmem:[%s3183_s8 + $0xd0] sm:$0xff]   ;;  %v2442_v25 = vld [vmem:[%s3183_s8 + $0x20] sm:$0xff]   ;;  %v2447_v30 = vld [vmem:[%s3183_s8 + $0xe8] sm:$0xff]  }
  0x39   : > { %2275 = vmatpush3.bf16.msra.mxu0 %v2387_v20  ;;  %v2436_v19 = vld [vmem:[%s3183_s8 + $0x90] sm:$0xff]   ;;  %v2437_v20 = vld [vmem:[%s3183_s8 + $0x58] sm:$0xff]   ;;  %v2467_v60 = vld [vmem:[%s3183_s8 + $0x168] sm:$0xff]   ;;  %p2503_p4 = pnand %p2502_p3, %p2677_p10  ;;  %p2510_p8 = por %p2509_p7, %p2508_p6 }
  0x3a   : > { %2276 = vmatprep.subr.bf16.mxu0 %v2568_v1  ;;  %2124 = vmatpush3.bf16.msra.mxu1 %v2389_v21  ;;  %v2438_v21 = vld [vmem:[%s3183_s8 + $0x18] sm:$0xff]   ;;  %v2473_v2 = vld [vmem:[%s3185_s10 + $0x40] sm:$0xff]   ;;  %v2475_v7 = vld [vmem:[%s3185_s10 + $0x50] sm:$0xff]  }
  0x3b   : > { %2125 = vmatprep.subr.bf16.mxu1 %v2391_v23  ;;  %v2440_v23 = vld [vmem:[%s3183_s8 + $0x98] sm:$0xff]   ;;  %p2504_p5 = pneg %p2503_p4 }
  0x3c   : > { %v2472_v3 = vld [vmem:[%s3183_s8 + $0x138] sm:$0xff]  }
  0x3d   : > { %2277 = vmatpush3.bf16.msra.mxu0 %v2390_v22  ;;  %v2439_v22 = vld [vmem:[%s3183_s8 + $0xd8] sm:$0xff]   ;;  %p2511_p9 = pnand %p2510_p8, %p2504_p5 }
  0x3e   : > { %2133 = vmatprep.subr.bf16.mxu0 %v2393_v27  ;;  %2126 = vmatpush3.bf16.msra.mxu1 %v2392_v26  ;;  %v2443_v26 = vld [vmem:[%s3183_s8 + $0xe0] sm:$0xff]  }
  0x3f   : > { %2155 = vmatprep.subr.bf16.mxu1 %v2395_v32  ;;  %v2444_v27 = vld [vmem:[%s3183_s8 + $0xa0] sm:$0xff]   ;;  %v2449_v32 = vld [vmem:[%s3183_s8 + $0x70] sm:$0xff]  }
  0x40   : > { %2279 = vmatmul.mubr.bf16.vlgmr.msra.gmra.mrb[0].mxu0 %v438_v31  ;;  %v2448_v31 = vld [vmem:[%s3183_s8 + $0xa8] sm:$0xff]  }
  0x41   : > { %2134 = vmatpush3.bf16.msra.mxu0 %v2394_v29  ;;  %987 = vmatmul.mubr.bf16.vlgmr.msra.gmra.mrb[0].mxu1 %v557_v34  ;;  %v2446_v29 = vld [vmem:[%s3183_s8 + $0x28] sm:$0xff]   ;;  %v2451_v34 = vld [vmem:[%s3183_s8 + $0xf0] sm:$0xff]  }
  0x42   : > { %2135 = vmatprep.subr.bf16.mxu0 %v2397_v35  ;;  %2156 = vmatpush3.bf16.msra.mxu1 %v2396_v33  ;;  %v2450_v33 = vld [vmem:[%s3183_s8 + $0x30] sm:$0xff]  }
  0x43   : > { %2157 = vmatprep.subr.bf16.mxu1 %v2399_v37  ;;  %1026 = vmatprep.mubr.bf16.mxu0 %v560_v63  ;;  %v2452_v35 = vld [vmem:[%s3183_s8 + $0xb0] sm:$0xff]   ;;  %v2454_v37 = vld [vmem:[%s3183_s8 + $0x38] sm:$0xff]  }
  0x44   : > { %1066 = vmatprep.mubr.bf16.mxu1 %v562_v5  ;;  %v2470_v63 = vld [vmem:[%s3183_s8 + $0x130] sm:$0xff]  }
  0x45   : > { %2136 = vmatpush3.bf16.msra.mxu0 %v2398_v36  ;;  %v2453_v36 = vld [vmem:[%s3183_s8 + $0x78] sm:$0xff]  }
  0x46   : > { %2137 = vmatprep.subr.bf16.mxu0 %v2401_v39  ;;  %2158 = vmatpush3.bf16.msra.mxu1 %v2400_v38  ;;  %v2455_v38 = vld [vmem:[%s3183_s8 + $0xf8] sm:$0xff]   ;;  %v1076_v39 = vld [vmem:[%s2976_s18 + $0x8] sm:$0xff] }
  0x47   : > { %2159 = vmatprep.subr.bf16.mxu1 %v2403_v41  ;;  %v2456_v41 = vld [vmem:[%s3183_s8 + $0xb8] sm:$0xff]  }
  0x49   : > { %2138 = vmatpush3.bf16.msra.mxu0 %v2402_v40  ;;  %v1082_v40 = vpack.c.bf16 %v1076_v39, %v1076_v39  ;;  %v2478_v39 = vld [vmem:[%s3185_s10 + $0x8] sm:$0xff]  }
  0x4a   : > { %2139 = vmatprep.subr.bf16.mxu0 %v2405_v43  ;;  %2160 = vmatpush3.bf16.msra.mxu1 %v2404_v42  ;;  %v1075_v42 = vld [vmem:[%s2976_s18] sm:$0xff] }
  0x4b   : > { %2161 = vmatprep.subr.bf16.mxu1 %v2407_v45  ;;  %v2457_v43 = vld [vmem:[%s3183_s8 + $0x140] sm:$0xff]   ;;  %v1081_v45 = vpack.c.bf16 %v1075_v42, %v1075_v42 }
  0x4c   : > { %v2481_v42 = vld [vmem:[%s3185_s10 + $0x20] sm:$0xff]  }
  0x4d   : > { %2140 = vmatpush3.bf16.msra.mxu0 %v2406_v44  ;;  %v1078_v44 = vld [vmem:[%s2976_s18 + $0x18] sm:$0xff] }
  0x4e   : > { %2141 = vmatprep.subr.bf16.mxu0 %v2409_v47  ;;  %2162 = vmatpush3.bf16.msra.mxu1 %v2408_v46  ;;  %v1084_v46 = vpack.c.bf16 %v1078_v44, %v1078_v44  ;;  %v1077_v47 = vld [vmem:[%s2976_s18 + $0x10] sm:$0xff]  ;;  %v1972_v44 = vld [vmem:[%s3180_s5] ss:$0 sm:$0xff] }
  0x4f   : > { %2163 = vmatprep.subr.bf16.mxu1 %v2411_v49  ;;  %v1083_v49 = vpack.c.bf16 %v1077_v47, %v1077_v47 }
  0x51   : > { %2142 = vmatpush3.bf16.msra.mxu0 %v2410_v48  ;;  %v2458_v48 = vld [vmem:[%s3183_s8 + $0x100] sm:$0xff]  }
  0x52   : > { %2143 = vmatprep.subr.bf16.mxu0 %v2413_v51  ;;  %2164 = vmatpush3.bf16.msra.mxu1 %v2412_v50  ;;  %v2459_v50 = vld [vmem:[%s3183_s8 + $0x148] sm:$0xff]  }
  0x53   : > { %2165 = vmatprep.subr.bf16.mxu1 %v2415_v53  ;;  %v2460_v51 = vld [vmem:[%s3183_s8 + $0x108] sm:$0xff]   ;;  %v2462_v53 = vld [vmem:[%s3183_s8 + $0x110] sm:$0xff]  }
  0x55   : > { %2144 = vmatpush3.bf16.msra.mxu0 %v2414_v52  ;;  %v2461_v52 = vld [vmem:[%s3183_s8 + $0x150] sm:$0xff]  }
  0x56   : > { %2145 = vmatprep.subr.bf16.mxu0 %v2417_v55  ;;  %2166 = vmatpush3.bf16.msra.mxu1 %v2416_v54  ;;  %v2463_v54 = vld [vmem:[%s3183_s8 + $0x158] sm:$0xff]  }
  0x57   : > { %2167 = vmatprep.subr.bf16.mxu1 %v2419_v57  ;;  %v2464_v55 = vld [vmem:[%s3183_s8 + $0x118] sm:$0xff]   ;;  %v1080_v57 = vld [vmem:[%s2976_s18 + $0x28] sm:$0xff] }
  0x59   : > { %2146 = vmatpush3.bf16.msra.mxu0 %v2418_v56  ;;  %v2465_v56 = vld [vmem:[%s3183_s8 + $0x160] sm:$0xff]  }
  0x5a   : > { %2147 = vmatprep.subr.bf16.mxu0 %v2421_v59  ;;  %2168 = vmatpush3.bf16.msra.mxu1 %v2420_v58  ;;  %v2466_v58 = vld [vmem:[%s3183_s8 + $0x120] sm:$0xff]   ;;  %v1086_v59 = vpack.c.bf16 %v1080_v57, %v1080_v57 }
  0x5b   : > { %2169 = vmatprep.subr.bf16.mxu1 %v2423_v62  ;;  %v2469_v62 = vld [vmem:[%s3183_s8 + $0x170] sm:$0xff]  }
  0x5d   : > { %2148 = vmatpush3.bf16.msra.mxu0 %v2422_v61  ;;  %v2468_v61 = vld [vmem:[%s3183_s8 + $0x128] sm:$0xff]  }
  0x5e   : > { %2177 = vmatprep.subr.bf16.mxu0 %v2425_v4  ;;  %2170 = vmatpush3.bf16.msra.mxu1 %v2424_v0  ;;  %v2471_v0 = vld [vmem:[%s3183_s8 + $0x178] sm:$0xff]   ;;  %v1079_v4 = vld [vmem:[%s2976_s18 + $0x20] sm:$0xff] }
  0x5f   : > { %2199 = vmatprep.subr.bf16.mxu1 %v2427_v9  ;;  %v1085_v5 = vpack.c.bf16 %v1079_v4, %v1079_v4  ;;  %v2485_v9 = vld [vmem:[%s3185_s10 + $0x60] sm:$0xff]  }
  0x60   : > { %1027 = vmatmul.mubr.bf16.vlgmr.msra.gmra.mrb[4].mxu0 %v559_v8  ;;  %v2476_v8 = vld [vmem:[%s3185_s10 + $0x58] sm:$0xff]  }
  0x61   : > { %2178 = vmatpush3.bf16.msra.mxu0 %v2426_v6  ;;  %1067 = vmatmul.mubr.bf16.vlgmr.msra.gmra.mrb[4].mxu1 %v561_v11  ;;  %v2474_v6 = vld [vmem:[%s3185_s10 + $0x48] sm:$0xff]   ;;  %v2487_v11 = vld [vmem:[%s3185_s10 + $0x70] sm:$0xff]  }
  0x62   : > { %2179 = vmatprep.subr.bf16.mxu0 %v2429_v12  ;;  %2200 = vmatpush3.bf16.msra.mxu1 %v2428_v10  ;;  %v2486_v10 = vld [vmem:[%s3185_s10 + $0x68] sm:$0xff]   ;;  %v2488_v12 = vld [vmem:[%s3185_s10 + $0x78] sm:$0xff]  }
  0x63   : > { %2201 = vmatprep.subr.bf16.mxu1 %v2431_v14  ;;  %1510 = vmatprep.mubr.bf16.mxu0 %v1082_v40  ;;  %v2479_v40 = vld [vmem:[%s3185_s10 + $0x10] sm:$0xff]  }
  0x64   : > { %1550 = vmatprep.mubr.bf16.mxu1 %v1084_v46  ;;  %v2030_v46 = vld [vmem:[%s3184_s9] ss:$0 sm:$0xff] }
  0x65   : > { %2180 = vmatpush3.bf16.msra.mxu0 %v2430_v13 }
  0x66   : > { %2181 = vmatprep.subr.bf16.mxu0 %v2433_v16  ;;  %2202 = vmatpush3.bf16.msra.mxu1 %v2432_v15 }
  0x67   : > { %2203 = vmatprep.subr.bf16.mxu1 %v2435_v18 }
  0x69   : > { %2182 = vmatpush3.bf16.msra.mxu0 %v2434_v17 }
  0x6a   : > { %2183 = vmatprep.subr.bf16.mxu0 %v2437_v20  ;;  %2204 = vmatpush3.bf16.msra.mxu1 %v2436_v19 }
  0x6b   : > { %2205 = vmatprep.subr.bf16.mxu1 %v2439_v22  ;;  %v1981_v22 = vld [vmem:[%s3182_s7] ss:$0 sm:$0xff] }
  0x6d   : > { %2184 = vmatpush3.bf16.msra.mxu0 %v2438_v21 }
  0x6e   : > { %2185 = vmatprep.subr.bf16.mxu0 %v2441_v24  ;;  %2206 = vmatpush3.bf16.msra.mxu1 %v2440_v23 }
  0x6f   : > { %2207 = vmatprep.subr.bf16.mxu1 %v2443_v26 }
  0x71   : > { %2186 = vmatpush3.bf16.msra.mxu0 %v2442_v25 }
  0x72   : > { %2187 = vmatprep.subr.bf16.mxu0 %v2445_v28  ;;  %2208 = vmatpush3.bf16.msra.mxu1 %v2444_v27 }
  0x73   : > { %2209 = vmatprep.subr.bf16.mxu1 %v2447_v30 }
  0x75   : > { %2188 = vmatpush3.bf16.msra.mxu0 %v2446_v29 }
  0x76   : > { %2189 = vmatprep.subr.bf16.mxu0 %v2449_v32  ;;  %2210 = vmatpush3.bf16.msra.mxu1 %v2448_v31 }
  0x77   : > { %2211 = vmatprep.subr.bf16.mxu1 %v2451_v34 }
  0x79   : > { %2190 = vmatpush3.bf16.msra.mxu0 %v2450_v33 }
  0x7a   : > { %2191 = vmatprep.subr.bf16.mxu0 %v2453_v36  ;;  %2212 = vmatpush3.bf16.msra.mxu1 %v2452_v35 }
  0x7b   : > { %2213 = vmatprep.subr.bf16.mxu1 %v2455_v38 }
  0x7d   : > { %2192 = vmatpush3.bf16.msra.mxu0 %v2454_v37  ;;  %v2477_v37 = vld [vmem:[%s3185_s10] sm:$0xff]  }
  0x7e   : > { %2221 = vmatprep.subr.bf16.mxu0 %v2457_v43  ;;  %2214 = vmatpush3.bf16.msra.mxu1 %v2456_v41  ;;  %v2480_v41 = vld [vmem:[%s3185_s10 + $0x18] sm:$0xff]   ;;  %v2482_v43 = vld [vmem:[%s3185_s10 + $0x28] sm:$0xff]  }
  0x7f   : > { %2282 = vmatprep.subr.bf16.mxu1 %v2568_v1 }
  0x80   : > { %1511 = vmatmul.mubr.bf16.vlgmr.msra.gmra.mrb[8].mxu0 %v1081_v45 }
  0x81   : > { %2222 = vmatpush3.bf16.msra.mxu0 %v2458_v48  ;;  %1551 = vmatmul.mubr.bf16.vlgmr.msra.gmra.mrb[8].mxu1 %v1083_v49  ;;  %v2483_v48 = vld [vmem:[%s3185_s10 + $0x30] sm:$0xff]  }
  0x82   : > { %2223 = vmatprep.subr.bf16.mxu0 %v2459_v50  ;;  %2290 = vmatprep.mubr.msk.bf16.mxu1 %vm2569_vm0, %v2568_v1 }
  0x83   : > { %1590 = vmatprep.mubr.bf16.mxu0 %v1086_v59  ;;  %2283 = vmatpush3.bf16.msra.mxu1 %v2473_v2 }
  0x84   : > { %2284 = vmatprep.subr.bf16.mxu1 %v2568_v1 }
  0x85   : > { %2224 = vmatpush3.bf16.msra.mxu0 %v2460_v51 }
  0x86   : > { %2225 = vmatprep.subr.bf16.mxu0 %v2461_v52 }
  0x87   : > { %2285 = vmatpush3.bf16.msra.mxu1 %v2474_v6 }
  0x88   : > { %2286 = vmatprep.subr.bf16.mxu1 %v2568_v1 }
  0x89   : > { %2226 = vmatpush3.bf16.msra.mxu0 %v2462_v53 }
  0x8a   : > { %2227 = vmatprep.subr.bf16.mxu0 %v2463_v54 }
  0x8b   : > { %2287 = vmatpush3.bf16.msra.mxu1 %v2475_v7 }
  0x8c   : > { %2288 = vmatprep.subr.bf16.mxu1 %v2568_v1 }
  0x8d   : > { %2228 = vmatpush3.bf16.msra.mxu0 %v2464_v55 }
  0x8e   : > { %2229 = vmatprep.subr.bf16.mxu0 %v2465_v56 }
  0x8f   : > { %2289 = vmatpush3.bf16.msra.mxu1 %v2476_v8 }
  0x90   : > { %2294 = vmatprep.subr.bf16.mxu1 %v2568_v1 }
  0x91   : > { %2230 = vmatpush3.bf16.msra.mxu0 %v2466_v58  ;;  %v2484_v58 = vld [vmem:[%s3185_s10 + $0x38] sm:$0xff]  }
  0x92   : > { %2231 = vmatprep.subr.bf16.mxu0 %v2467_v60 }
  0x95   : > { %2232 = vmatpush3.bf16.msra.mxu0 %v2468_v61 }
  0x96   : > { %2233 = vmatprep.subr.bf16.mxu0 %v2469_v62 }
  0x99   : > { %2234 = vmatpush3.bf16.msra.mxu0 %v2470_v63 }
  0x9a   : > { %2235 = vmatprep.subr.bf16.mxu0 %v2471_v0 }
  0x9d   : > { %2236 = vmatpush3.bf16.msra.mxu0 %v2472_v3 }
  0x9e   : > { %2314 = vmatprep.subr.bf16.mxu0 %v2568_v1 }
  0xa0   : > { %1591 = vmatmul.mubr.bf16.vlgmr.msra.gmra.mrb[12].mxu0 %v1085_v5 }
  0xa1   : > { %2322 = vmatprep.mubr.msk.bf16.mxu0 %vm2569_vm0, %v2568_v1  ;;  %2315 = vmatpush3.bf16.msra.mxu0 %v2485_v9 }
  0xa2   : > { %2316 = vmatprep.subr.bf16.mxu0 %v2568_v1 }
  0xa5   : > { %2317 = vmatpush3.bf16.msra.mxu0 %v2486_v10 }
  0xa6   : > { %2318 = vmatprep.subr.bf16.mxu0 %v2568_v1 }
  0xa9   : > { %2319 = vmatpush3.bf16.msra.mxu0 %v2487_v11 }
  0xaa   : > { %2320 = vmatprep.subr.bf16.mxu0 %v2568_v1 }
  0xad   : > { %2321 = vmatpush3.bf16.msra.mxu0 %v2488_v12 }
 0x113   : > { %v544_v13 = vpop.f32.mrb[0].mxu0 }
 0x114   : > { %v2280_v14 = vpop.f32.mrb[1].mxu0  ;;  %v2127_v16 = vpop.f32.mrb[0].mxu1  ;;  %v545_v49 = vadd.f32 %v1972_v44, %v544_v13 }
 0x115   : > { %v547_v15 = vpop.f32.mrb[2].mxu0  ;;  %v2128_v18 = vpop.f32.mrb[1].mxu1 }
 0x116   : > { %v2281_v17 = vpop.f32.mrb[3].mxu0  ;;  %v2129_v19 = vadd.f32 %v2128_v18, %v2127_v16  ;;  %v2130_v20 = vpop.f32.mrb[2].mxu1  ;;  %v550_v60 = vmax.f32 %v545_v49, 0.0 }
 0x117   : > { %v2131_v21 = vpop.f32.mrb[3].mxu1  ;;  %v2097_v17 = vld [vmem:[%s3186_s11] ss:$0 sm:$0xff] }
 0x118   : > { %v989_v23 = vadd.f32 %v2129_v19, %v1981_v22  ;;  %v1631_v62 = vpack.c.bf16 %v550_v60, %v550_v60 }
 0x133   : > { %v2149_v24 = vpop.f32.mrb[4].mxu0 }
 0x134   : > { %v2150_v25 = vpop.f32.mrb[5].mxu0  ;;  %v2171_v28 = vpop.f32.mrb[4].mxu1 }
 0x135   : > { %v2151_v26 = vadd.f32 %v2150_v25, %v2149_v24  ;;  %v2152_v27 = vpop.f32.mrb[6].mxu0  ;;  %v2172_v30 = vpop.f32.mrb[5].mxu1 }
 0x136   : > { %v2153_v29 = vpop.f32.mrb[7].mxu0  ;;  %v2173_v32 = vadd.f32 %v2172_v30, %v2171_v28  ;;  %v2174_v33 = vpop.f32.mrb[6].mxu1 }
 0x137   : > { %v1029_v31 = vadd.f32 %v2151_v26, %v989_v23  ;;  %v2175_v34 = vpop.f32.mrb[7].mxu1 }
 0x139   : > { %v1069_v35 = vadd.f32 %v2173_v32, %v1029_v31 }
 0x13b   : > { %v1074_v36 = vmax.f32 %v1069_v35, 0.0 }
 0x13d   : > { %v1632_v38 = vpack.c.bf16 %v1074_v36, %v1074_v36 }
 0x13f   : > { %2291 = vmatmul.mubr.msk.bf16.vlgmr.msra.gmra.mrb[12].mxu1 %vm1657_vm1, %v1632_v38 }
 0x140   : > { %2295 = vmatpush3.bf16.msra.mxu1 %v2477_v37  ;;  %2310 = vmatprep.mubr.msk.bf16.mxu1 %vm2569_vm0, %v2568_v1 }
 0x141   : > { %2296 = vmatprep.subr.bf16.mxu1 %v2568_v1 }
 0x144   : > { %2297 = vmatpush3.bf16.msra.mxu1 %v2478_v39 }
 0x145   : > { %2298 = vmatprep.subr.bf16.mxu1 %v2568_v1 }
 0x148   : > { %2299 = vmatpush3.bf16.msra.mxu1 %v2479_v40 }
 0x149   : > { %2300 = vmatprep.subr.bf16.mxu1 %v2568_v1 }
 0x14c   : > { %2301 = vmatpush3.bf16.msra.mxu1 %v2480_v41 }
 0x14d   : > { %2302 = vmatprep.subr.bf16.mxu1 %v2568_v1 }
 0x150   : > { %2303 = vmatpush3.bf16.msra.mxu1 %v2481_v42 }
 0x151   : > { %2304 = vmatprep.subr.bf16.mxu1 %v2568_v1 }
 0x153   : > { %v2193_v45 = vpop.f32.mrb[8].mxu0 }
 0x154   : > { %2305 = vmatpush3.bf16.msra.mxu1 %v2482_v43  ;;  %v2194_v47 = vpop.f32.mrb[9].mxu0  ;;  %v2215_v52 = vpop.f32.mrb[8].mxu1 }
 0x155   : > { %v2195_v50 = vadd.f32 %v2194_v47, %v2193_v45  ;;  %v2196_v51 = vpop.f32.mrb[10].mxu0  ;;  %2306 = vmatprep.subr.bf16.mxu1 %v2568_v1  ;;  %v2216_v54 = vpop.f32.mrb[9].mxu1 }
 0x156   : > { %v2197_v53 = vpop.f32.mrb[11].mxu0  ;;  %v2217_v56 = vadd.f32 %v2216_v54, %v2215_v52  ;;  %v2218_v57 = vpop.f32.mrb[10].mxu1 }
 0x157   : > { %v1513_v55 = vadd.f32 %v2195_v50, %v2030_v46  ;;  %v2219_v59 = vpop.f32.mrb[11].mxu1 }
 0x158   : > { %2307 = vmatpush3.bf16.msra.mxu1 %v2483_v48 }
 0x159   : > { %v1553_v61 = vadd.f32 %v2217_v56, %v1513_v55  ;;  %2308 = vmatprep.subr.bf16.mxu1 %v2568_v1 }
 0x15c   : > { %2309 = vmatpush3.bf16.msra.mxu1 %v2484_v58 }
 0x15f   : > { %2311 = vmatmul.mubr.bf16.vlgmr.msra.gmra.mrb[16].mxu1 %v1631_v62 }
 0x173   : > { %v2237_v63 = vpop.f32.mrb[12].mxu0 }
 0x174   : > { %v2238_v0 = vpop.f32.mrb[13].mxu0 }
 0x175   : > { %v2239_v2 = vadd.f32 %v2238_v0, %v2237_v63  ;;  %v2240_v3 = vpop.f32.mrb[14].mxu0 }
 0x176   : > { %v2241_v4 = vpop.f32.mrb[15].mxu0 }
 0x177   : > { %v1593_v5 = vadd.f32 %v2239_v2, %v1553_v61 }
 0x179   : > { %v1598_v6 = vmax.f32 %v1593_v5, 0.0 }
 0x17b   : > { %v1789_v7 = vpack.c.bf16 %v1598_v6, %v1598_v6 }
 0x17d   : > { %2323 = vmatmul.mubr.msk.bf16.vlgmr.msra.gmra.mrb[16].mxu0 %vm1657_vm1, %v1789_v7 }
 0x212   : > { %v1695_v8 = vpop.f32.mrb[12].mxu1 }
 0x213   : > { %v2292_v9 = vpop.f32.mrb[13].mxu1 }
 0x214   : > { %v1698_v10 = vpop.f32.mrb[14].mxu1 }
 0x215   : > { %v2293_v11 = vpop.f32.mrb[15].mxu1 }
 0x232   : > { %v1783_v1 = vpop.f32.mrb[16].mxu1 }
 0x233   : > { %v1784_v12 = vadd.f32 %v1783_v1, %v1695_v8  ;;  %v2312_v13 = vpop.f32.mrb[17].mxu1 }
 0x234   : > { %v1786_v14 = vpop.f32.mrb[18].mxu1 }
 0x235   : > { %v2313_v15 = vpop.f32.mrb[19].mxu1 }
 0x250   : > { %v1851_v16 = vpop.f32.mrb[16].mxu0 }
 0x251   : > { %v1857_v18 = vadd.f32 %v1851_v16, %v1784_v12  ;;  %v2324_v19 = vpop.f32.mrb[17].mxu0 }
 0x252   : > { %v1854_v20 = vpop.f32.mrb[18].mxu0 }
 0x253   : > { %v1865_v21 = vadd.f32 %v2097_v17, %v1857_v18  ;;  %v2325_v22 = vpop.f32.mrb[19].mxu0 }
 0x255   : > { %1866 = vst [vmem:[%s419_s0] sm:$0xff] %v1865_v21 }
 0x256   : > { %2514 = shalt.err (!%p2511_p9)
}
 0x257   : > { %s2515_s24 = scalar_lea.hbm %s3133_s16, 128  ;;  %s2519_s14 = scalar_lea.hbm %s3187_s12, 256 }
 0x258   : > { %p2516_p12 = scmp.ne.s32.totalorder %s3133_s16, %s2515_s24  ;;  %p2520_p1 = scmp.lt.u32.totalorder %s3133_s16, %s3187_s12 }
 0x259   : > { %p2521_p2 = scmp.lt.u32.totalorder %s2519_s14, %s2515_s24  ;;  %p2523_p4 = scmp.lt.u32.totalorder %s2515_s24, %s3133_s16 }
 0x25a   : > { %p2517_p13 = pnand %p2516_p12, %p2677_p10 }
 0x25b   : > { %p2522_p3 = por %p2521_p2, %p2520_p1 }
 0x25c   : > { %p2518_p0 = pneg %p2517_p13 }
 0x25d   : > { %p2524_p5 = por %p2523_p4, %p2522_p3 }
 0x25f   : > { %p2525_p6 = pnand %p2524_p5, %p2518_p0 }
 0x261   : > { %2528 = shalt.err (!%p2525_p6)
}
 0x262   : > { %2327 = dma.vmem_to_hbm [thread:$0]  (%p2677_p10), %s3135_s30, 128, %s3133_s16, %s1868_s19  }
 0x263 PF: > { %p2333_p7 = scmp.ge.s32.totalorder %s2565_s28, 2  ;;  %s1893_s18 = sand.u32 1, %s2553_s26  }
 0x264   : > { %s1894_s29 = scalar_lea.sflag [#allocation5], %s1893_s18 }
 0x265   : > { %p2330_p8 = pnand %p2333_p7, %p2681_p11 }
 0x267   : > { %2548 = dma.done.wait (!%p2330_p8), %s1894_s29, 128  }
 0x268   : > { %2550 = vsyncadd (!%p2330_p8), %s1894_s29, 4294967168  ;;  %s3201_s28 = sld [smem:[#allocation9_spill]]  ;;  %s3202_s15 = sld [smem:[#allocation8_spill]] }
 0x269   : > { %s3203_s0 = sld [smem:[#allocation10_spill]]  ;;  %s3204_s26 = smov %s2557_s27 }
 0x26e   : > { %p28_p9 = scmp.ge.s32.totalorder %s3201_s28, 4   ;;  %s3205_s27 = smov %s3202_s15 }
 0x270   :  { %30 = sbr.rel (!%p28_p9) target bundleno = 18 (0x12), region = 105 }
 0x277   :  { %1899 = vsyncpa [#allocation5], 1 }
 0x278   :  { %1901 = vsyncpa [#allocation5 + $0x1], 1 }

</bundles_post_ra>
